<compile_context>
chip_gen: v6e
topology: v6e:2x2x1
jax: 0.10.0
libtpu: 0.0.40
codegen_flags: <defaults>
</compile_context>

<pallas_src>
import functools

import jax
import jax.numpy as jnp
from jax.experimental import pallas as pl
from jax.experimental.pallas import tpu as pltpu


def _round_up(n, m):
    return (n + m - 1) // m * m


def mlp_kernel(x_ref, w1_ref, b1_ref, w2_ref, b2_ref, w3_ref, b3_ref,
               out_ref, *, n_classes):
    # Layer 1: Linear(784 -> 256pad) + ReLU   (bf16 operands, f32 accumulate)
    h1 = jnp.dot(x_ref[...], w1_ref[...], preferred_element_type=jnp.float32)
    h1 = jnp.maximum(h1 + b1_ref[...], 0.0).astype(jnp.bfloat16)

    # Layer 2: Linear(256pad -> 128pad) + ReLU
    h2 = jnp.dot(h1, w2_ref[...], preferred_element_type=jnp.float32)
    h2 = jnp.maximum(h2 + b2_ref[...], 0.0).astype(jnp.bfloat16)

    # Layer 3: Linear(128pad -> 128pad)
    logits = jnp.dot(h2, w3_ref[...], preferred_element_type=jnp.float32)
    logits = logits + b3_ref[...]

    # Mask padded class columns to a huge negative so they do not perturb the
    # max or the logsumexp normalization.
    col = jax.lax.broadcasted_iota(jnp.int32, logits.shape, 1)
    logits = jnp.where(col < n_classes, logits, jnp.float32(-1e30))

    # Numerically stable log_softmax over dim=1 (class axis).
    m = jnp.max(logits, axis=-1, keepdims=True)
    shifted = logits - m
    lse = jnp.log(jnp.sum(jnp.exp(shifted), axis=-1, keepdims=True))
    out_ref[...] = (shifted - lse).astype(out_ref.dtype)


def mlp_forward(x, w1, b1, w2, b2, w3, b3, *, tile_b=256):
    """x: [B, 784] f32.  W_i: [in, out] f32 (transposed vs PyTorch), b_i: [1, out]."""
    B, d_in = x.shape
    n_classes = w3.shape[1]

    # Lane-aligned padded widths: 250 -> 256, 100 -> 128, 10 -> 128.
    H1 = _round_up(w1.shape[1], 128)
    H2 = _round_up(w2.shape[1], 128)
    NC = _round_up(n_classes, 128)

    # Batch tile: 256 fills the MXU on v6e/v7x (and is 2 passes on v5e's
    # 4x128x128). For small batches use the sublane-rounded batch itself so we
    # don't pay padding compute.
    TILE_B = min(tile_b, _round_up(B, 8))
    B_pad = _round_up(B, TILE_B)

    def pad2(a, shape, dtype):
        buf = jnp.zeros(shape, dtype)
        return buf.at[: a.shape[0], : a.shape[1]].set(a.astype(dtype))

    x_p = pad2(x, (B_pad, d_in), jnp.bfloat16)
    w1_p = pad2(w1, (d_in, H1), jnp.bfloat16)
    w2_p = pad2(w2, (H1, H2), jnp.bfloat16)
    w3_p = pad2(w3, (H2, NC), jnp.bfloat16)
    b1_p = pad2(b1.reshape(1, -1), (1, H1), jnp.float32)
    b2_p = pad2(b2.reshape(1, -1), (1, H2), jnp.float32)
    b3_p = pad2(b3.reshape(1, -1), (1, NC), jnp.float32)

    grid = (B_pad // TILE_B,)
    kernel = functools.partial(mlp_kernel, n_classes=n_classes)

    flops = 2 * B * (784 * 250 + 250 * 100 + 100 * 10)
    bytes_accessed = (
        x_p.size * 2                       # bf16 input tiles
        + (w1_p.size + w2_p.size + w3_p.size) * 2   # bf16 weights (resident)
        + (b1_p.size + b2_p.size + b3_p.size) * 4   # f32 biases
        + B_pad * NC * 4                   # f32 output
    )

    out_pad = pl.pallas_call(
        kernel,
        out_shape=jax.ShapeDtypeStruct((B_pad, NC), jnp.float32),
        grid=grid,
        in_specs=[
            pl.BlockSpec((TILE_B, d_in), lambda i: (i, 0)),   # x: tiled on batch
            pl.BlockSpec((d_in, H1), lambda i: (0, 0)),       # weights/biases:
            pl.BlockSpec((1, H1), lambda i: (0, 0)),          #   constant block,
            pl.BlockSpec((H1, H2), lambda i: (0, 0)),         #   stay resident
            pl.BlockSpec((1, H2), lambda i: (0, 0)),
            pl.BlockSpec((H2, NC), lambda i: (0, 0)),
            pl.BlockSpec((1, NC), lambda i: (0, 0)),
        ],
        out_specs=pl.BlockSpec((TILE_B, NC), lambda i: (i, 0)),
        compiler_params=pltpu.CompilerParams(
            dimension_semantics=("parallel",)),
        cost_estimate=pl.CostEstimate(
            flops=flops,
            transcendentals=B * n_classes,
            bytes_accessed=bytes_accessed),
    )(x_p, w1_p, b1_p, w2_p, b2_p, w3_p, b3_p)

    # Drop batch padding and the 118 padded class columns.
    return out_pad[:B, :n_classes]


def init_linear_params(key, in_features, out_features):
    # Mimic PyTorch nn.Linear default init: U(-1/sqrt(in), 1/sqrt(in)).
    kw, kb = jax.random.split(key)
    bound = 1.0 / jnp.sqrt(jnp.float32(in_features))
    w = jax.random.uniform(
        kw, (in_features, out_features), jnp.float32, -bound, bound)
    b = jax.random.uniform(kb, (1, out_features), jnp.float32, -bound, bound)
    return w, b


def reference_forward(x, w1, b1, w2, b2, w3, b3):
    # Matches the kernel's precision policy: bf16 operands, f32 accumulation.
    bf = jnp.bfloat16
    h1 = jnp.maximum(
        jnp.dot(x.astype(bf), w1.astype(bf),
                preferred_element_type=jnp.float32) + b1, 0.0)
    h2 = jnp.maximum(
        jnp.dot(h1.astype(bf), w2.astype(bf),
                preferred_element_type=jnp.float32) + b2, 0.0)
    logits = jnp.dot(h2.astype(bf), w3.astype(bf),
                     preferred_element_type=jnp.float32) + b3
    return jax.nn.log_softmax(logits, axis=1)


if __name__ == "__main__":
    key = jax.random.PRNGKey(0)
    k_x, k1, k2, k3 = jax.random.split(key, 4)

    batch = 8
    x = jax.random.normal(k_x, (batch, 784), jnp.float32)

    w1, b1 = init_linear_params(k1, 784, 250)
    w2, b2 = init_linear_params(k2, 250, 100)
    w3, b3 = init_linear_params(k3, 100, 10)

    out = mlp_forward(x, w1, b1, w2, b2, w3, b3)
    out = jax.block_until_ready(out)

    ref = reference_forward(x, w1, b1, w2, b2, w3, b3)
    assert out.shape == (batch, 10)
    assert jnp.allclose(out, ref, atol=2e-3, rtol=2e-3), "mismatch vs reference"

    print("KERNEL_OK")
</pallas_src>

<mosaic_0001>
module attributes {stable_mosaic.version = 11 : i64} {
  func.func @mlp_kernel(%arg0: i32, %arg1: memref<8x784xbf16, #tpu.memory_space<vmem>>, %arg2: memref<784x256xbf16, #tpu.memory_space<vmem>>, %arg3: memref<1x256xf32, #tpu.memory_space<vmem>>, %arg4: memref<256x128xbf16, #tpu.memory_space<vmem>>, %arg5: memref<1x128xf32, #tpu.memory_space<vmem>>, %arg6: memref<128x128xbf16, #tpu.memory_space<vmem>>, %arg7: memref<1x128xf32, #tpu.memory_space<vmem>>, %arg8: memref<8x128xf32, #tpu.memory_space<vmem>>) attributes {dimension_semantics = [#tpu.dimension_semantics<parallel>], iteration_bounds = array<i64: 1>, scalar_prefetch = 0 : i64, scratch_operands = 0 : i64, tpu.core_type = #tpu.core_type<tc>, window_params = [{transform_indices = @transform_0, window_bounds = array<i64: 8, 784>}, {pipeline_mode = #tpu.pipeline_mode<synchronous>, transform_indices = @transform_1, window_bounds = array<i64: 784, 256>}, {pipeline_mode = #tpu.pipeline_mode<synchronous>, transform_indices = @transform_2, window_bounds = array<i64: 1, 256>}, {pipeline_mode = #tpu.pipeline_mode<synchronous>, transform_indices = @transform_3, window_bounds = array<i64: 256, 128>}, {pipeline_mode = #tpu.pipeline_mode<synchronous>, transform_indices = @transform_4, window_bounds = array<i64: 1, 128>}, {pipeline_mode = #tpu.pipeline_mode<synchronous>, transform_indices = @transform_5, window_bounds = array<i64: 128, 128>}, {pipeline_mode = #tpu.pipeline_mode<synchronous>, transform_indices = @transform_6, window_bounds = array<i64: 1, 128>}, {transform_indices = @transform_7, window_bounds = array<i64: 8, 128>}]} {
    %c0 = arith.constant 0 : index
    %c0_0 = arith.constant 0 : index
    %0 = vector.load %arg1[%c0, %c0_0] : memref<8x784xbf16, #tpu.memory_space<vmem>>, vector<8x784xbf16>
    %c0_1 = arith.constant 0 : index
    %c0_2 = arith.constant 0 : index
    %1 = vector.load %arg2[%c0_1, %c0_2] : memref<784x256xbf16, #tpu.memory_space<vmem>>, vector<784x256xbf16>
    %cst = arith.constant dense<0.000000e+00> : vector<8x256xf32>
    %2 = tpu.matmul %0, %1, %cst {dimension_numbers = #tpu.dot_dimension_numbers<[1], [0], [0], [1], [0, 0, 1, 1], [], []>} : vector<8x784xbf16>, vector<784x256xbf16>, vector<8x256xf32> -> vector<8x256xf32>
    %c0_3 = arith.constant 0 : index
    %c0_4 = arith.constant 0 : index
    %3 = vector.load %arg3[%c0_3, %c0_4] : memref<1x256xf32, #tpu.memory_space<vmem>>, vector<1x256xf32>
    %4 = vector.broadcast %3 : vector<1x256xf32> to vector<8x256xf32>
    %5 = arith.addf %2, %4 : vector<8x256xf32>
    %cst_5 = arith.constant 0.000000e+00 : f32
    %6 = vector.broadcast %cst_5 : f32 to vector<8x256xf32>
    %7 = arith.maximumf %5, %6 : vector<8x256xf32>
    %8 = arith.truncf %7 : vector<8x256xf32> to vector<8x256xbf16>
    %c0_6 = arith.constant 0 : index
    %c0_7 = arith.constant 0 : index
    %9 = vector.load %arg4[%c0_6, %c0_7] : memref<256x128xbf16, #tpu.memory_space<vmem>>, vector<256x128xbf16>
    %cst_8 = arith.constant dense<0.000000e+00> : vector<8x128xf32>
    %10 = tpu.matmul %8, %9, %cst_8 {dimension_numbers = #tpu.dot_dimension_numbers<[1], [0], [0], [1], [0, 0, 1, 1], [], []>} : vector<8x256xbf16>, vector<256x128xbf16>, vector<8x128xf32> -> vector<8x128xf32>
    %c0_9 = arith.constant 0 : index
    %c0_10 = arith.constant 0 : index
    %11 = vector.load %arg5[%c0_9, %c0_10] : memref<1x128xf32, #tpu.memory_space<vmem>>, vector<1x128xf32>
    %12 = vector.broadcast %11 : vector<1x128xf32> to vector<8x128xf32>
    %13 = arith.addf %10, %12 : vector<8x128xf32>
    %cst_11 = arith.constant 0.000000e+00 : f32
    %14 = vector.broadcast %cst_11 : f32 to vector<8x128xf32>
    %15 = arith.maximumf %13, %14 : vector<8x128xf32>
    %16 = arith.truncf %15 : vector<8x128xf32> to vector<8x128xbf16>
    %c0_12 = arith.constant 0 : index
    %c0_13 = arith.constant 0 : index
    %17 = vector.load %arg6[%c0_12, %c0_13] : memref<128x128xbf16, #tpu.memory_space<vmem>>, vector<128x128xbf16>
    %cst_14 = arith.constant dense<0.000000e+00> : vector<8x128xf32>
    %18 = tpu.matmul %16, %17, %cst_14 {dimension_numbers = #tpu.dot_dimension_numbers<[1], [0], [0], [1], [0, 0, 1, 1], [], []>} : vector<8x128xbf16>, vector<128x128xbf16>, vector<8x128xf32> -> vector<8x128xf32>
    %c0_15 = arith.constant 0 : index
    %c0_16 = arith.constant 0 : index
    %19 = vector.load %arg7[%c0_15, %c0_16] : memref<1x128xf32, #tpu.memory_space<vmem>>, vector<1x128xf32>
    %20 = vector.broadcast %19 : vector<1x128xf32> to vector<8x128xf32>
    %21 = arith.addf %18, %20 : vector<8x128xf32>
    %22 = tpu.iota {dimensions = array<i32: 1>} : vector<8x128xi32>
    %c10_i32 = arith.constant 10 : i32
    %23 = vector.broadcast %c10_i32 : i32 to vector<8x128xi32>
    %24 = arith.cmpi slt, %22, %23 : vector<8x128xi32>
    %cst_17 = arith.constant -1.000000e+30 : f32
    %25 = vector.broadcast %cst_17 : f32 to vector<8x128xf32>
    %26 = arith.select %24, %21, %25 : vector<8x128xi1>, vector<8x128xf32>
    %cst_18 = arith.constant dense<0xFF800000> : vector<8xf32>
    %27 = vector.multi_reduction <maximumf>, %26, %cst_18 [1] : vector<8x128xf32> to vector<8xf32>
    %28 = vector.shape_cast %27 : vector<8xf32> to vector<8x1xf32>
    %29 = vector.broadcast %28 : vector<8x1xf32> to vector<8x128xf32>
    %30 = arith.subf %26, %29 : vector<8x128xf32>
    %31 = math.exp %30 : vector<8x128xf32>
    %cst_19 = arith.constant dense<0.000000e+00> : vector<8xf32>
    %32 = vector.multi_reduction <add>, %31, %cst_19 [1] : vector<8x128xf32> to vector<8xf32>
    %33 = vector.shape_cast %32 : vector<8xf32> to vector<8x1xf32>
    %34 = math.log %33 : vector<8x1xf32>
    %35 = vector.broadcast %34 : vector<8x1xf32> to vector<8x128xf32>
    %36 = arith.subf %30, %35 : vector<8x128xf32>
    %c0_20 = arith.constant 0 : index
    %c0_21 = arith.constant 0 : index
    %37 = vector.load %arg8[%c0_20, %c0_21] : memref<8x128xf32, #tpu.memory_space<vmem>>, vector<8x128xf32>
    tpu.vector_store %arg8[%c0_20, %c0_21], %36 {strides = array<i32>} : memref<8x128xf32, #tpu.memory_space<vmem>>, vector<8x128xf32>,
    return
  }
  func.func @transform_0(%arg0: i32) -> (i32, i32) {
    %c0_i32 = arith.constant 0 : i32
    %c0_i32_0 = arith.constant 0 : i32
    return %arg0, %c0_i32 : i32, i32
  }
  func.func @transform_1(%arg0: i32) -> (i32, i32) {
    %c0_i32 = arith.constant 0 : i32
    %c0_i32_0 = arith.constant 0 : i32
    %c0_i32_1 = arith.constant 0 : i32
    return %c0_i32, %c0_i32_0 : i32, i32
  }
  func.func @transform_2(%arg0: i32) -> (i32, i32) {
    %c0_i32 = arith.constant 0 : i32
    %c0_i32_0 = arith.constant 0 : i32
    %c0_i32_1 = arith.constant 0 : i32
    return %c0_i32, %c0_i32_0 : i32, i32
  }
  func.func @transform_3(%arg0: i32) -> (i32, i32) {
    %c0_i32 = arith.constant 0 : i32
    %c0_i32_0 = arith.constant 0 : i32
    %c0_i32_1 = arith.constant 0 : i32
    return %c0_i32, %c0_i32_0 : i32, i32
  }
  func.func @transform_4(%arg0: i32) -> (i32, i32) {
    %c0_i32 = arith.constant 0 : i32
    %c0_i32_0 = arith.constant 0 : i32
    %c0_i32_1 = arith.constant 0 : i32
    return %c0_i32, %c0_i32_0 : i32, i32
  }
  func.func @transform_5(%arg0: i32) -> (i32, i32) {
    %c0_i32 = arith.constant 0 : i32
    %c0_i32_0 = arith.constant 0 : i32
    %c0_i32_1 = arith.constant 0 : i32
    return %c0_i32, %c0_i32_0 : i32, i32
  }
  func.func @transform_6(%arg0: i32) -> (i32, i32) {
    %c0_i32 = arith.constant 0 : i32
    %c0_i32_0 = arith.constant 0 : i32
    %c0_i32_1 = arith.constant 0 : i32
    return %c0_i32, %c0_i32_0 : i32, i32
  }
  func.func @transform_7(%arg0: i32) -> (i32, i32) {
    %c0_i32 = arith.constant 0 : i32
    %c0_i32_0 = arith.constant 0 : i32
    return %arg0, %c0_i32 : i32, i32
  }
}

</mosaic_0001>

<bundles_post_ra>
// kernel: tpu_custom_call.1
= control target key start
LH: loop header
LB: loop body
LE: loop exit
PB: predicated region body
PF: predicated region fallthrough
CT: control target
= control target key end

     0   :  { %12 = vsyncpa [#allocation3], 0  ;;  %s1778_s0 = inlined_call_operand.hbm [shape: bf16[8,784], index: 0, kind: input, shape index: {}]   ;;  %s1779_s1 = inlined_call_operand.hbm [shape: bf16[784,256], index: 1, kind: input, shape index: {}]   ;;  %s1780_s2 = inlined_call_operand.vmem [shape: f32[1,256], index: 2, kind: input, shape index: {}]   ;;  %s1781_s3 = inlined_call_operand.hbm [shape: bf16[256,128], index: 3, kind: input, shape index: {}]   ;;  %s1782_s4 = inlined_call_operand.vmem [shape: f32[1,128], index: 4, kind: input, shape index: {}]   ;;  %s1783_s5 = inlined_call_operand.hbm [shape: bf16[128,128], index: 5, kind: input, shape index: {}]   ;;  %s1784_s6 = inlined_call_operand.vmem [shape: f32[1,128], index: 6, kind: input, shape index: {}]   ;;  %s1785_s7 = inlined_call_operand.hbm [shape: f32[8,128], index: 7, kind: output, shape index: {}]  }
   0x1   :  { %13 = vsyncpa [#allocation6], 0 }
   0x2   :  { %14 = vsyncpa [#allocation9], 0 }
   0x3   :  { %15 = vsyncpa [#allocation4], 0  ;;  %s1686_s24 = smov [#allocation5]  }
   0x4   :  { %s31_s25 = sshll.u32 %s1686_s24, 4  ;;  %s32_s25 = int_to_ptr.vmem [resolvable:$true] %s31_s25 }
   0x5   :  { %s1586_s26 = scalar_lea.vmem %s32_s25, 12544  ;;  %p1591_p1 = scmp.lt.s32.totalorder %s32_s25, %s32_s25 }
   0x6   :  { %p1587_p0 = scmp.ne.s32.totalorder %s32_s25, %s1586_s26  ;;  %p1592_p2 = scmp.lt.s32.totalorder %s1586_s26, %s1586_s26 }
   0x8   :  { %p1593_p3 = por %p1592_p2, %p1591_p1 }
   0xa   :  { %p1594_p4 = pnand %p1593_p3, %p1587_p0 }
   0xc   :  { %1597 = shalt.err (!%p1594_p4)
}
   0xd   :  { %s1687_s27 = smov 128   ;;  %s1688_s28 = smov 8  }
   0xe   :  { %37 = dma.hbm_to_vmem [thread:$0]  %s1779_s1, 12544, %s32_s25, [#allocation6], %s1687_s27, %s1687_s27, %s1688_s28  }
   0xf   :  { %s1689_s8 = smov [#allocation2]   ;;  %s1690_s10 = smov [#allocation7]  }
  0x10   :  { %s22_s9 = sshll.u32 %s1689_s8, 4  ;;  %s45_s11 = sshll.u32 %s1690_s10, 4  ;;  %s23_s9 = int_to_ptr.vmem [resolvable:$true] %s22_s9  ;;  %s46_s11 = int_to_ptr.vmem [resolvable:$true] %s45_s11 }
  0x11   :  { %s1606_s12 = scalar_lea.vmem %s23_s9, 448  ;;  %p1611_p6 = scmp.lt.s32.totalorder %s23_s9, %s23_s9 }
  0x12   :  { %p1607_p5 = scmp.ne.s32.totalorder %s23_s9, %s1606_s12  ;;  %p1612_p7 = scmp.lt.s32.totalorder %s1606_s12, %s1606_s12 }
  0x14   :  { %p1613_p8 = por %p1612_p7, %p1611_p6 }
  0x16   :  { %p1614_p9 = pnand %p1613_p8, %p1607_p5 }
  0x18   :  { %1617 = shalt.err (!%p1614_p9)
}
  0x19   :  { %25 = dma.hbm_to_vmem [thread:$0]  %s1778_s0, 448, %s23_s9, [#allocation3]  }
  0x1a   :  { %s1626_s15 = scalar_lea.vmem %s46_s11, 2048  ;;  %p1631_p11 = scmp.lt.s32.totalorder %s46_s11, %s46_s11 }
  0x1b   :  { %p1627_p10 = scmp.ne.s32.totalorder %s46_s11, %s1626_s15  ;;  %p1632_p12 = scmp.lt.s32.totalorder %s1626_s15, %s1626_s15 }
  0x1d   :  { %p1633_p13 = por %p1632_p12, %p1631_p11 }
  0x1f   :  { %p1634_p0 = pnand %p1633_p13, %p1627_p10 }
  0x21   :  { %1637 = shalt.err (!%p1634_p0)
}
  0x22   :  { %s1691_s1 = smov 64   ;;  %s1692_s16 = smov 4  }
  0x23   :  { %51 = dma.hbm_to_vmem [thread:$0]  %s1781_s3, 2048, %s46_s11, [#allocation6], %s1691_s1, %s1691_s1, %s1692_s16  }
  0x24   :  { %s1693_s19 = smov [#allocation8]  }
  0x25   :  { %s59_s20 = sshll.u32 %s1693_s19, 4  ;;  %s60_s20 = int_to_ptr.vmem [resolvable:$true] %s59_s20 }
  0x26   :  { %s1646_s21 = scalar_lea.vmem %s60_s20, 1024  ;;  %p1651_p2 = scmp.lt.s32.totalorder %s60_s20, %s60_s20 }
  0x27   :  { %p1647_p1 = scmp.ne.s32.totalorder %s60_s20, %s1646_s21  ;;  %p1652_p3 = scmp.lt.s32.totalorder %s1646_s21, %s1646_s21 }
  0x29   :  { %p1653_p4 = por %p1652_p3, %p1651_p2 }
  0x2b   :  { %p1654_p5 = pnand %p1653_p4, %p1647_p1 }
  0x2d   :  { %1657 = shalt.err (!%p1654_p5)
}
  0x2e   :  { %65 = dma.hbm_to_vmem [thread:$0]  %s1783_s5, 1024, %s60_s20, [#allocation9], %s1691_s1, %s1691_s1, %s1692_s16  }
  0x2f   :  { %1678 = dma.done.wait [#allocation3], 448  }
  0x30   :  { %1679 = vsyncadd [#allocation3], 4294966848 }
  0x31   :  { %1680 = dma.done.wait [#allocation6], 14592  }
  0x32   :  { %1681 = vsyncadd [#allocation6], 4294952704 }
  0x33   :  { %1682 = dma.done.wait [#allocation9], 1024  }
  0x34   :  { %1683 = vsyncadd [#allocation9], 4294966272  ;;  %v1396_v0 = vld [vmem:[#allocation5 + $0x74] ss:$8 sps:$4 sm:$0xff]   ;;  %v1398_v1 = vld [vmem:[#allocation5 + $0x70] ss:$8 sps:$4 sm:$0xff]  }
  0x35   :  { %713 = vmatprep.subr.bf16.mxu0 %v1396_v0  ;;  %v1399_v2 = vld [vmem:[#allocation5 + $0x174] ss:$8 sps:$4 sm:$0xff]   ;;  %v1401_v3 = vld [vmem:[#allocation5 + $0x170] ss:$8 sps:$4 sm:$0xff]   ;;  %v1402_v4 = vld [vmem:[#allocation5 + $0x64] ss:$8 sps:$4 sm:$0xff]  }
  0x36   :  { %714 = vmatpush1.bf16.msra.mxu0 %v1398_v1  ;;  %v1404_v5 = vld [vmem:[#allocation5 + $0x60] ss:$8 sps:$4 sm:$0xff]   ;;  %754 = vmatprep.subr.bf16.mxu1 %v1399_v2  ;;  %v1405_v6 = vld [vmem:[#allocation5 + $0x164] ss:$8 sps:$4 sm:$0xff]   ;;  %v1408_v8 = vld [vmem:[#allocation5 + $0x54] ss:$8 sps:$4 sm:$0xff]  }
  0x37   :  { %755 = vmatpush1.bf16.msra.mxu1 %v1401_v3  ;;  %715 = vmatprep.subr.bf16.mxu0 %v1402_v4  ;;  %v1407_v7 = vld [vmem:[#allocation5 + $0x160] ss:$8 sps:$4 sm:$0xff]   ;;  %v1410_v9 = vld [vmem:[#allocation5 + $0x50] ss:$8 sps:$4 sm:$0xff]   ;;  %v1411_v10 = vld [vmem:[#allocation5 + $0x154] ss:$8 sps:$4 sm:$0xff]  }
  0x38   :  { %756 = vmatprep.subr.bf16.mxu1 %v1405_v6  ;;  %v1414_v11 = vld [vmem:[#allocation5 + $0x44] ss:$8 sps:$4 sm:$0xff]   ;;  %v1413_v12 = vld [vmem:[#allocation5 + $0x150] ss:$8 sps:$4 sm:$0xff]   ;;  %v1416_v14 = vld [vmem:[#allocation5 + $0x40] ss:$8 sps:$4 sm:$0xff]  }
  0x39   :  { %v1417_v13 = vld [vmem:[#allocation5 + $0x144] ss:$8 sps:$4 sm:$0xff]   ;;  %v1420_v15 = vld [vmem:[#allocation5 + $0x34] ss:$8 sps:$4 sm:$0xff]   ;;  %v1419_v16 = vld [vmem:[#allocation5 + $0x140] ss:$8 sps:$4 sm:$0xff]  }
  0x3a   :  { %716 = vmatpush1.bf16.msra.mxu0 %v1404_v5  ;;  %v1423_v17 = vld [vmem:[#allocation5 + $0x134] ss:$8 sps:$4 sm:$0xff]   ;;  %v1422_v18 = vld [vmem:[#allocation5 + $0x30] ss:$8 sps:$4 sm:$0xff]   ;;  %v1426_v19 = vld [vmem:[#allocation5 + $0x24] ss:$8 sps:$4 sm:$0xff]  }
  0x3b   :  { %717 = vmatprep.subr.bf16.mxu0 %v1408_v8  ;;  %757 = vmatpush1.bf16.msra.mxu1 %v1407_v7  ;;  %v1425_v20 = vld [vmem:[#allocation5 + $0x130] ss:$8 sps:$4 sm:$0xff]   ;;  %v1429_v21 = vld [vmem:[#allocation5 + $0x124] ss:$8 sps:$4 sm:$0xff]   ;;  %v1428_v22 = vld [vmem:[#allocation5 + $0x20] ss:$8 sps:$4 sm:$0xff]  }
  0x3c   :  { %758 = vmatprep.subr.bf16.mxu1 %v1411_v10  ;;  %v1432_v23 = vld [vmem:[#allocation5 + $0x14] ss:$8 sps:$4 sm:$0xff]   ;;  %v1431_v24 = vld [vmem:[#allocation5 + $0x120] ss:$8 sps:$4 sm:$0xff]   ;;  %v1434_v26 = vld [vmem:[#allocation5 + $0x10] ss:$8 sps:$4 sm:$0xff]  }
  0x3d   :  { %v1435_v25 = vld [vmem:[#allocation5 + $0x114] ss:$8 sps:$4 sm:$0xff]   ;;  %v1438_v27 = vld [vmem:[#allocation5 + $0x4] ss:$8 sps:$4 sm:$0xff]   ;;  %v1437_v28 = vld [vmem:[#allocation5 + $0x110] ss:$8 sps:$4 sm:$0xff]  }
  0x3e   :  { %718 = vmatpush1.bf16.msra.mxu0 %v1410_v9  ;;  %v1441_v29 = vld [vmem:[#allocation5 + $0x104] ss:$8 sps:$4 sm:$0xff]   ;;  %v1440_v30 = vld [vmem:[#allocation5] ss:$8 sps:$4 sm:$0xff]   ;;  %v1444_v31 = vld [vmem:[#allocation5 + $0xf4] ss:$8 sps:$4 sm:$0xff]  }
  0x3f   :  { %719 = vmatprep.subr.bf16.mxu0 %v1414_v11  ;;  %759 = vmatpush1.bf16.msra.mxu1 %v1413_v12  ;;  %v1443_v32 = vld [vmem:[#allocation5 + $0x100] ss:$8 sps:$4 sm:$0xff]   ;;  %v1447_v33 = vld [vmem:[#allocation5 + $0x1f4] ss:$8 sps:$4 sm:$0xff]   ;;  %v1446_v34 = vld [vmem:[#allocation5 + $0xf0] ss:$8 sps:$4 sm:$0xff]  }
  0x40   :  { %760 = vmatprep.subr.bf16.mxu1 %v1417_v13  ;;  %v1450_v35 = vld [vmem:[#allocation5 + $0xe4] ss:$8 sps:$4 sm:$0xff]   ;;  %v1449_v36 = vld [vmem:[#allocation5 + $0x1f0] ss:$8 sps:$4 sm:$0xff]   ;;  %v1452_v38 = vld [vmem:[#allocation5 + $0xe0] ss:$8 sps:$4 sm:$0xff]  }
  0x41   :  { %v1453_v37 = vld [vmem:[#allocation5 + $0x1e4] ss:$8 sps:$4 sm:$0xff]   ;;  %v1456_v39 = vld [vmem:[#allocation5 + $0xd4] ss:$8 sps:$4 sm:$0xff]   ;;  %v1455_v40 = vld [vmem:[#allocation5 + $0x1e0] ss:$8 sps:$4 sm:$0xff]  }
  0x42   :  { %720 = vmatpush1.bf16.msra.mxu0 %v1416_v14  ;;  %v1459_v41 = vld [vmem:[#allocation5 + $0x1d4] ss:$8 sps:$4 sm:$0xff]   ;;  %v1458_v42 = vld [vmem:[#allocation5 + $0xd0] ss:$8 sps:$4 sm:$0xff]   ;;  %v1462_v43 = vld [vmem:[#allocation5 + $0xc4] ss:$8 sps:$4 sm:$0xff]  }
  0x43   :  { %721 = vmatprep.subr.bf16.mxu0 %v1420_v15  ;;  %761 = vmatpush1.bf16.msra.mxu1 %v1419_v16  ;;  %v1461_v44 = vld [vmem:[#allocation5 + $0x1d0] ss:$8 sps:$4 sm:$0xff]   ;;  %v1465_v45 = vld [vmem:[#allocation5 + $0x1c4] ss:$8 sps:$4 sm:$0xff]   ;;  %v1464_v47 = vld [vmem:[#allocation5 + $0xc0] ss:$8 sps:$4 sm:$0xff]  }
  0x44   :  { %762 = vmatprep.subr.bf16.mxu1 %v1423_v17  ;;  %v81_v46 = vld [vmem:[#allocation2] sm:$0xff]  ;;  %v1468_v49 = vld [vmem:[#allocation5 + $0xb4] ss:$8 sps:$4 sm:$0xff]   ;;  %v82_v50 = vld [vmem:[#allocation2 + $0x8] sm:$0xff]  ;;  %vm709_vm0 = vcmask 130048   ;;  %v1694_v16 = vmov 0  }
  0x45   :  { %v1202_v48 = vcombine.high %v81_v46, %v81_v46  ;;  %v1467_v51 = vld [vmem:[#allocation5 + $0x1c0] ss:$8 sps:$4 sm:$0xff]   ;;  %v1204_v52 = vcombine.high %v82_v50, %v82_v50  ;;  %v1471_v53 = vld [vmem:[#allocation5 + $0x1b4] ss:$8 sps:$4 sm:$0xff]   ;;  %v1470_v54 = vld [vmem:[#allocation5 + $0xb0] ss:$8 sps:$4 sm:$0xff]   ;;  %v1201_v5 = vcombine.low %v81_v46, %v81_v46  ;;  %v1203_v7 = vcombine.low %v82_v50, %v82_v50 }
  0x46   :  { %722 = vmatpush1.bf16.msra.mxu0 %v1422_v18  ;;  %v1474_v55 = vld [vmem:[#allocation5 + $0xa4] ss:$8 sps:$4 sm:$0xff]   ;;  %v1473_v56 = vld [vmem:[#allocation5 + $0x1b0] ss:$8 sps:$4 sm:$0xff]   ;;  %v1476_v58 = vld [vmem:[#allocation5 + $0xa0] ss:$8 sps:$4 sm:$0xff]  }
  0x47   :  { %723 = vmatprep.subr.bf16.mxu0 %v1426_v19  ;;  %763 = vmatpush1.bf16.msra.mxu1 %v1425_v20  ;;  %v1477_v57 = vld [vmem:[#allocation5 + $0x1a4] ss:$8 sps:$4 sm:$0xff]   ;;  %v1480_v59 = vld [vmem:[#allocation5 + $0x94] ss:$8 sps:$4 sm:$0xff]   ;;  %v1479_v60 = vld [vmem:[#allocation5 + $0x1a0] ss:$8 sps:$4 sm:$0xff]  }
  0x48   :  { %764 = vmatprep.subr.bf16.mxu1 %v1429_v21  ;;  %745 = vmatprep.mubr.bf16.mxu0 %v1202_v48  ;;  %v1483_v61 = vld [vmem:[#allocation5 + $0x194] ss:$8 sps:$4 sm:$0xff]   ;;  %v1482_v62 = vld [vmem:[#allocation5 + $0x90] ss:$8 sps:$4 sm:$0xff]   ;;  %v1486_v63 = vld [vmem:[#allocation5 + $0x84] ss:$8 sps:$4 sm:$0xff]  }
  0x49   :  { %786 = vmatprep.mubr.bf16.mxu1 %v1204_v52  ;;  %v1485_v0 = vld [vmem:[#allocation5 + $0x190] ss:$8 sps:$4 sm:$0xff]   ;;  %v1489_v1 = vld [vmem:[#allocation5 + $0x184] ss:$8 sps:$4 sm:$0xff]   ;;  %v1488_v2 = vld [vmem:[#allocation5 + $0x80] ss:$8 sps:$4 sm:$0xff]  }
  0x4a   :  { %724 = vmatpush1.bf16.msra.mxu0 %v1428_v22  ;;  %v1496_v3 = vld [vmem:[#allocation5 + $0x274] ss:$8 sps:$4 sm:$0xff]   ;;  %v1493_v4 = vld [vmem:[#allocation5 + $0x180] ss:$8 sps:$4 sm:$0xff]   ;;  %v1494_v6 = vld [vmem:[#allocation5 + $0x270] ss:$8 sps:$4 sm:$0xff]  }
  0x4b   :  { %725 = vmatprep.subr.bf16.mxu0 %v1432_v23  ;;  %765 = vmatpush1.bf16.msra.mxu1 %v1431_v24  ;;  %v1501_v8 = vld [vmem:[#allocation5 + $0x264] ss:$8 sps:$4 sm:$0xff]   ;;  %v1541_v10 = vld [vmem:[#allocation5 + $0x300] ss:$8 sps:$4 sm:$0xff]   ;;  %v1750_v12 = vld [vmem:[#allocation2 + $0x10] sm:$0xff]  ;;  %vm1696_vm1 = vmmov 0  }
  0x4c   :  { %766 = vmatprep.subr.bf16.mxu1 %v1435_v25  ;;  %v1543_v9 = vld [vmem:[#allocation5 + $0x304] ss:$8 sps:$4 sm:$0xff]   ;;  %v1499_v11 = vld [vmem:[#allocation5 + $0x260] ss:$8 sps:$4 sm:$0xff]   ;;  %v1504_v13 = vld [vmem:[#allocation5 + $0x254] ss:$8 sps:$4 sm:$0xff]   ;;  %v1206_v14 = vcombine.high %v1750_v12, %v1750_v12 }
  0x4d   :  { %v1502_v15 = vld [vmem:[#allocation5 + $0x250] ss:$8 sps:$4 sm:$0xff]   ;;  %v1507_v17 = vld [vmem:[#allocation5 + $0x244] ss:$8 sps:$4 sm:$0xff]   ;;  %v1547_v18 = vld [vmem:[#allocation2 + $0x18] ss:$0 sps:$4 sm:$0xff]  }
  0x4e   :  { %726 = vmatpush1.bf16.msra.mxu0 %v1434_v26  ;;  %v1505_v19 = vld [vmem:[#allocation5 + $0x240] ss:$8 sps:$4 sm:$0xff]   ;;  %v1510_v20 = vld [vmem:[#allocation5 + $0x234] ss:$8 sps:$4 sm:$0xff]   ;;  %v1508_v21 = vld [vmem:[#allocation5 + $0x230] ss:$8 sps:$4 sm:$0xff]  }
  0x4f   :  { %727 = vmatprep.subr.bf16.mxu0 %v1438_v27  ;;  %767 = vmatpush1.bf16.msra.mxu1 %v1437_v28  ;;  %v1513_v22 = vld [vmem:[#allocation5 + $0x224] ss:$8 sps:$4 sm:$0xff]   ;;  %v1511_v23 = vld [vmem:[#allocation5 + $0x220] ss:$8 sps:$4 sm:$0xff]   ;;  %v1516_v24 = vld [vmem:[#allocation5 + $0x214] ss:$8 sps:$4 sm:$0xff]  }
  0x50   :  { %768 = vmatprep.subr.bf16.mxu1 %v1441_v29  ;;  %v1514_v25 = vld [vmem:[#allocation5 + $0x210] ss:$8 sps:$4 sm:$0xff]   ;;  %v1519_v26 = vld [vmem:[#allocation5 + $0x204] ss:$8 sps:$4 sm:$0xff]   ;;  %v1517_v27 = vld [vmem:[#allocation5 + $0x200] ss:$8 sps:$4 sm:$0xff]  }
  0x51   :  { %v1522_v28 = vld [vmem:[#allocation5 + $0x2f4] ss:$8 sps:$4 sm:$0xff]   ;;  %v1520_v29 = vld [vmem:[#allocation5 + $0x2f0] ss:$8 sps:$4 sm:$0xff]   ;;  %v1551_v46 = vld [vmem:[#allocation7 + $0x38] sm:$0xff]  }
  0x52   :  { %728 = vmatpush1.bf16.msra.mxu0 %v1440_v30  ;;  %v1525_v30 = vld [vmem:[#allocation5 + $0x2e4] ss:$8 sps:$4 sm:$0xff]   ;;  %v1555_v50 = vld [vmem:[#allocation7 + $0x28] sm:$0xff]   ;;  %v1557_v52 = vld [vmem:[#allocation7 + $0x20] sm:$0xff]  }
  0x53   :  { %729 = vmatprep.subr.bf16.mxu0 %v1444_v31  ;;  %769 = vmatpush1.bf16.msra.mxu1 %v1443_v32  ;;  %v1523_v31 = vld [vmem:[#allocation5 + $0x2e0] ss:$8 sps:$4 sm:$0xff]   ;;  %v1528_v32 = vld [vmem:[#allocation5 + $0x2d4] ss:$8 sps:$4 sm:$0xff]  }
  0x54   :  { %770 = vmatprep.subr.bf16.mxu1 %v1447_v33  ;;  %v1526_v33 = vld [vmem:[#allocation5 + $0x2d0] ss:$8 sps:$4 sm:$0xff]   ;;  %v1553_v48 = vld [vmem:[#allocation7 + $0x30] sm:$0xff]  }
  0x56   :  { %730 = vmatpush2.bf16.msra.mxu0 %v1446_v34  ;;  %v1531_v34 = vld [vmem:[#allocation5 + $0x2c4] ss:$8 sps:$4 sm:$0xff]  }
  0x57   :  { %731 = vmatprep.subr.bf16.mxu0 %v1450_v35  ;;  %771 = vmatpush2.bf16.msra.mxu1 %v1449_v36  ;;  %v1529_v35 = vld [vmem:[#allocation5 + $0x2c0] ss:$8 sps:$4 sm:$0xff]   ;;  %v1534_v36 = vld [vmem:[#allocation5 + $0x2b4] ss:$8 sps:$4 sm:$0xff]  }
  0x58   :  { %772 = vmatprep.subr.bf16.mxu1 %v1453_v37  ;;  %v1532_v37 = vld [vmem:[#allocation5 + $0x2b0] ss:$8 sps:$4 sm:$0xff]  }
  0x5a   :  { %732 = vmatpush2.bf16.msra.mxu0 %v1452_v38  ;;  %v1537_v38 = vld [vmem:[#allocation5 + $0x2a4] ss:$8 sps:$4 sm:$0xff]  }
  0x5b   :  { %733 = vmatprep.subr.bf16.mxu0 %v1456_v39  ;;  %773 = vmatpush2.bf16.msra.mxu1 %v1455_v40  ;;  %v1535_v39 = vld [vmem:[#allocation5 + $0x2a0] ss:$8 sps:$4 sm:$0xff]   ;;  %v1540_v40 = vld [vmem:[#allocation5 + $0x294] ss:$8 sps:$4 sm:$0xff]  }
  0x5c   :  { %774 = vmatprep.subr.bf16.mxu1 %v1459_v41  ;;  %v1538_v41 = vld [vmem:[#allocation5 + $0x290] ss:$8 sps:$4 sm:$0xff]  }
  0x5e   :  { %734 = vmatpush2.bf16.msra.mxu0 %v1458_v42  ;;  %v1546_v42 = vld [vmem:[#allocation5 + $0x284] ss:$8 sps:$4 sm:$0xff]  }
  0x5f   :  { %735 = vmatprep.subr.bf16.mxu0 %v1462_v43  ;;  %775 = vmatpush2.bf16.msra.mxu1 %v1461_v44  ;;  %v1544_v43 = vld [vmem:[#allocation5 + $0x280] ss:$8 sps:$4 sm:$0xff]   ;;  %v1205_v44 = vcombine.low %v1750_v12, %v1750_v12 }
  0x60   :  { %776 = vmatprep.subr.bf16.mxu1 %v1465_v45  ;;  %v1550_v45 = vld [vmem:[#allocation7 + $0x78] sm:$0xff]  }
  0x62   :  { %736 = vmatpush2.bf16.msra.mxu0 %v1464_v47  ;;  %v1552_v47 = vld [vmem:[#allocation7 + $0x70] sm:$0xff]  }
  0x63   :  { %737 = vmatprep.subr.bf16.mxu0 %v1468_v49  ;;  %777 = vmatpush2.bf16.msra.mxu1 %v1467_v51  ;;  %v1554_v49 = vld [vmem:[#allocation7 + $0x68] sm:$0xff]   ;;  %v1556_v51 = vld [vmem:[#allocation7 + $0x60] sm:$0xff]  }
  0x64   :  { %778 = vmatprep.subr.bf16.mxu1 %v1471_v53  ;;  %v1558_v53 = vld [vmem:[#allocation7 + $0x58] sm:$0xff]  }
  0x66   :  { %738 = vmatpush2.bf16.msra.mxu0 %v1470_v54  ;;  %v1559_v54 = vld [vmem:[#allocation7 + $0x18] sm:$0xff]  }
  0x67   :  { %739 = vmatprep.subr.bf16.mxu0 %v1474_v55  ;;  %779 = vmatpush2.bf16.msra.mxu1 %v1473_v56  ;;  %v1560_v55 = vld [vmem:[#allocation7 + $0x50] sm:$0xff]  }
  0x68   :  { %780 = vmatprep.subr.bf16.mxu1 %v1477_v57  ;;  %v1561_v56 = vld [vmem:[#allocation7 + $0x10] sm:$0xff]   ;;  %v1562_v57 = vld [vmem:[#allocation7 + $0x48] sm:$0xff]  }
  0x6a   :  { %740 = vmatpush2.bf16.msra.mxu0 %v1476_v58  ;;  %v1563_v58 = vld [vmem:[#allocation7 + $0x8] sm:$0xff]  }
  0x6b   :  { %741 = vmatprep.subr.bf16.mxu0 %v1480_v59  ;;  %781 = vmatpush2.bf16.msra.mxu1 %v1479_v60  ;;  %v1564_v59 = vld [vmem:[#allocation7 + $0x40] sm:$0xff]  }
  0x6c   :  { %782 = vmatprep.subr.bf16.mxu1 %v1483_v61  ;;  %v1565_v60 = vld [vmem:[#allocation7] sm:$0xff]   ;;  %v1695_v61 = vmov 0.0  }
  0x6e   :  { %742 = vmatpush2.bf16.msra.mxu0 %v1482_v62 }
  0x6f   :  { %743 = vmatprep.subr.bf16.mxu0 %v1486_v63  ;;  %783 = vmatpush2.bf16.msra.mxu1 %v1485_v0 }
  0x70   :  { %784 = vmatprep.subr.bf16.mxu1 %v1489_v1 }
  0x72   :  { %744 = vmatpush2.bf16.msra.mxu0 %v1488_v2 }
  0x73   :  { %795 = vmatprep.subr.bf16.mxu0 %v1496_v3  ;;  %785 = vmatpush2.bf16.msra.mxu1 %v1493_v4 }
  0x74   :  { %850 = vmatprep.subr.bf16.mxu1 %v1543_v9 }
  0x75   :  { %746 = vmatmul.mubr.bf16.vlgmr.msra.gmra.mxu0 %v1201_v5 }
  0x76   :  { %796 = vmatpush1.bf16.msra.mxu0 %v1494_v6  ;;  %787 = vmatmul.mubr.bf16.vlgmr.msra.gmra.mxu1 %v1203_v7 }
  0x77   :  { %797 = vmatprep.subr.bf16.mxu0 %v1501_v8  ;;  %851 = vmatpush1.bf16.msra.mxu1 %v1541_v10  ;;  %v185_v10 = vlaneseq }
  0x78   :  { %868 = vmatprep.mubr.bf16.mxu1 %v1694_v16  ;;  %827 = vmatprep.mubr.bf16.mxu0 %v1206_v14 }
  0x79   :  { %1333 = vmatprep.subr.bf16.mxu1 %v1550_v45 }
  0x7a   :  { %798 = vmatpush1.bf16.msra.mxu0 %v1499_v11  ;;  %v186_v11 = vshrl.u32 %v185_v10, 7 }
  0x7b   :  { %799 = vmatprep.subr.bf16.mxu0 %v1504_v13  ;;  %v183_v13 = vld [vmem:[%s1780_s2] sm:$0x3] }
  0x7c   :  { %v187_v12 = vsub.s32 0, %v186_v11  ;;  %v191_v14 = vsub.s32 1, %v186_v11 }
  0x7e   :  { %800 = vmatpush1.bf16.msra.mxu0 %v1502_v15  ;;  %1306 = vmatmul.mubr.msk.bf16.vlgmr.msra.gmra.mxu1 %vm709_vm0, %v1547_v18  ;;  %v188_v15 = vrot.slane %v183_v13, %v187_v12  ;;  %v192_v16 = vrot.slane %v183_v13, %v191_v14 }
  0x7f   :  { %801 = vmatprep.subr.bf16.mxu0 %v1507_v17  ;;  %1334 = vmatpush3.bf16.msra.mxu1 %v1551_v46 }
  0x80   :  { %1335 = vmatprep.subr.bf16.mxu1 %v1552_v47 }
  0x82   :  { %802 = vmatpush1.bf16.msra.mxu0 %v1505_v19 }
  0x83   :  { %803 = vmatprep.subr.bf16.mxu0 %v1510_v20  ;;  %1336 = vmatpush3.bf16.msra.mxu1 %v1553_v48 }
  0x84   :  { %1337 = vmatprep.subr.bf16.mxu1 %v1554_v49 }
  0x86   :  { %804 = vmatpush1.bf16.msra.mxu0 %v1508_v21 }
  0x87   :  { %805 = vmatprep.subr.bf16.mxu0 %v1513_v22  ;;  %1338 = vmatpush3.bf16.msra.mxu1 %v1555_v50  ;;  %v1170_v50 = vand.u32 127, %v185_v10 }
  0x88   :  { %1339 = vmatprep.subr.bf16.mxu1 %v1556_v51  ;;  %v1324_v51 = vld [vmem:[%s1784_s6] ss:$0 sm:$0xff] }
  0x89   :  { %vm1171_vm2 = vcmp.lt.s32.totalorder %v1170_v50, 10 }
  0x8a   :  { %806 = vmatpush1.bf16.msra.mxu0 %v1511_v23 }
  0x8b   :  { %807 = vmatprep.subr.bf16.mxu0 %v1516_v24  ;;  %1340 = vmatpush3.bf16.msra.mxu1 %v1557_v52 }
  0x8c   :  { %1341 = vmatprep.subr.bf16.mxu1 %v1558_v53 }
  0x8e   :  { %808 = vmatpush1.bf16.msra.mxu0 %v1514_v25 }
  0x8f   :  { %809 = vmatprep.subr.bf16.mxu0 %v1519_v26  ;;  %1342 = vmatpush3.bf16.msra.mxu1 %v1559_v54 }
  0x90   :  { %1343 = vmatprep.subr.bf16.mxu1 %v1560_v55 }
  0x92   :  { %810 = vmatpush1.bf16.msra.mxu0 %v1517_v27 }
  0x93   :  { %811 = vmatprep.subr.bf16.mxu0 %v1522_v28  ;;  %1344 = vmatpush3.bf16.msra.mxu1 %v1561_v56 }
  0x94   :  { %1345 = vmatprep.subr.bf16.mxu1 %v1562_v57 }
  0x96   :  { %812 = vmatpush2.bf16.msra.mxu0 %v1520_v29 }
  0x97   :  { %813 = vmatprep.subr.bf16.mxu0 %v1525_v30  ;;  %1346 = vmatpush3.bf16.msra.mxu1 %v1563_v58 }
  0x98   :  { %1347 = vmatprep.subr.bf16.mxu1 %v1564_v59 }
  0x9a   :  { %814 = vmatpush2.bf16.msra.mxu0 %v1523_v31 }
  0x9b   :  { %815 = vmatprep.subr.bf16.mxu0 %v1528_v32  ;;  %1348 = vmatpush3.bf16.msra.mxu1 %v1565_v60  ;;  %v1566_v32 = vld [vmem:[#allocation8 + $0x38] sm:$0xff]  }
  0x9c   :  { %1364 = vmatprep.subr.bf16.mxu1 %v1695_v61 }
  0x9e   :  { %816 = vmatpush2.bf16.msra.mxu0 %v1526_v33 }
  0x9f   :  { %817 = vmatprep.subr.bf16.mxu0 %v1531_v34  ;;  %v1567_v34 = vld [vmem:[#allocation8 + $0x30] sm:$0xff]  }
  0xa2   :  { %818 = vmatpush2.bf16.msra.mxu0 %v1529_v35  ;;  %v1568_v35 = vld [vmem:[#allocation8 + $0x28] sm:$0xff]  }
  0xa3   :  { %819 = vmatprep.subr.bf16.mxu0 %v1534_v36  ;;  %v1569_v36 = vld [vmem:[#allocation8 + $0x20] sm:$0xff]  }
  0xa6   :  { %820 = vmatpush2.bf16.msra.mxu0 %v1532_v37  ;;  %v1570_v37 = vld [vmem:[#allocation8 + $0x18] sm:$0xff]  }
  0xa7   :  { %821 = vmatprep.subr.bf16.mxu0 %v1537_v38  ;;  %v1571_v38 = vld [vmem:[#allocation8 + $0x10] sm:$0xff]  }
  0xaa   :  { %822 = vmatpush2.bf16.msra.mxu0 %v1535_v39  ;;  %v1572_v39 = vld [vmem:[#allocation8 + $0x8] sm:$0xff]  }
  0xab   :  { %823 = vmatprep.subr.bf16.mxu0 %v1540_v40  ;;  %v1573_v40 = vld [vmem:[#allocation8] sm:$0xff]  }
  0xae   :  { %824 = vmatpush2.bf16.msra.mxu0 %v1538_v41 }
  0xaf   :  { %825 = vmatprep.subr.bf16.mxu0 %v1546_v42  ;;  %v1307_v42 = vld [vmem:[%s1782_s4] ss:$0 sm:$0xff]  ;;  %s1697_s4 = smov [#allocation10]  }
  0xb0   :  { %s1190_s26 = sshll.u32 %s1697_s4, 4  ;;  %s1191_s26 = int_to_ptr.vmem [resolvable:$true] %s1190_s26 }
  0xb1   :  { %s1658_s6 = scalar_lea.vmem %s1191_s26, 128  ;;  %p1663_p7 = scmp.lt.s32.totalorder %s1191_s26, %s1191_s26 }
  0xb2   :  { %826 = vmatpush2.bf16.msra.mxu0 %v1544_v43  ;;  %p1659_p6 = scmp.ne.s32.totalorder %s1191_s26, %s1658_s6  ;;  %p1664_p8 = scmp.lt.s32.totalorder %s1658_s6, %s1658_s6 }
  0xb4   :  { %p1665_p9 = por %p1664_p8, %p1663_p7 }
  0xb5   :  { %828 = vmatmul.mubr.bf16.vlgmr.msra.gmra.mxu0 %v1205_v44 }
  0xb6   :  { %p1666_p10 = pnand %p1665_p9, %p1659_p6 }
 0x135   :  { %v747_v62 = vpop.f32.mrf.mxu0 }
 0x136   :  { %v788_v0 = vpop.f32.mrf.mxu1  ;;  %v748_v17 = vadd.f32 %v747_v62, %v188_v15 }
 0x137   :  { %v749_v63 = vpop.f32.mrf.mxu0 }
 0x138   :  { %v790_v2 = vpop.f32.mrf.mxu1  ;;  %v750_v18 = vadd.f32 %v749_v63, %v192_v16  ;;  %v789_v19 = vadd.f32 %v788_v0, %v748_v17 }
 0x139   :  { %v751_v1 = vpop.f32.mrf.mxu0 }
 0x13a   :  { %v792_v4 = vpop.f32.mrf.mxu1  ;;  %v791_v21 = vadd.f32 %v790_v2, %v750_v18 }
 0x13b   :  { %v752_v3 = vpop.f32.mrf.mxu0 }
 0x13c   :  { %v793_v5 = vpop.f32.mrf.mxu1 }
 0x13e   :  { %v870_v6 = vpop.f32.mrf.mxu1 }
 0x140   :  { %v872_v7 = vpop.f32.mrf.mxu1 }
 0x142   :  { %v874_v8 = vpop.f32.mrf.mxu1 }
 0x144   :  { %v875_v9 = vpop.f32.mrf.mxu1 }
 0x175   :  { %v829_v20 = vpop.f32.mrf.mxu0 }
 0x176   :  { %v830_v22 = vadd.f32 %v829_v20, %v789_v19 }
 0x177   :  { %v831_v23 = vpop.f32.mrf.mxu0 }
 0x178   :  { %v871_v24 = vadd.f32 %v870_v6, %v830_v22  ;;  %v832_v25 = vadd.f32 %v831_v23, %v791_v21 }
 0x179   :  { %v833_v26 = vpop.f32.mrf.mxu0 }
 0x17a   :  { %v873_v27 = vadd.f32 %v872_v7, %v832_v25  ;;  %v877_v28 = vmax.f32 %v871_v24, 0.0 }
 0x17b   :  { %v834_v29 = vpop.f32.mrf.mxu0 }
 0x17c   :  { %v878_v30 = vmax.f32 %v873_v27, 0.0  ;;  %v879_v33 = vpack.c.bf16 %v877_v28, %v877_v28 }
 0x17e   :  { %v880_v31 = vpack.c.bf16 %v878_v30, %v878_v30 }
 0x180   :  { %1048 = vmatprep.mubr.bf16.mxu1 %v880_v31 }
 0x181   :  { %1049 = vmatmul.mubr.bf16.vlgmr.msra.gmra.mxu1 %v879_v33 }
 0x182   :  { %1365 = vmatpush3.bf16.msra.mxu1 %v1566_v32  ;;  %1380 = vmatprep.mubr.msk.bf16.mxu1 %vm1696_vm1, %v1695_v61 }
 0x183   :  { %1366 = vmatprep.subr.bf16.mxu1 %v1695_v61 }
 0x186   :  { %1367 = vmatpush3.bf16.msra.mxu1 %v1567_v34 }
 0x187   :  { %1368 = vmatprep.subr.bf16.mxu1 %v1695_v61 }
 0x18a   :  { %1369 = vmatpush3.bf16.msra.mxu1 %v1568_v35 }
 0x18b   :  { %1370 = vmatprep.subr.bf16.mxu1 %v1695_v61 }
 0x18e   :  { %1371 = vmatpush3.bf16.msra.mxu1 %v1569_v36 }
 0x18f   :  { %1372 = vmatprep.subr.bf16.mxu1 %v1695_v61 }
 0x192   :  { %1373 = vmatpush3.bf16.msra.mxu1 %v1570_v37 }
 0x193   :  { %1374 = vmatprep.subr.bf16.mxu1 %v1695_v61 }
 0x196   :  { %1375 = vmatpush3.bf16.msra.mxu1 %v1571_v38 }
 0x197   :  { %1376 = vmatprep.subr.bf16.mxu1 %v1695_v61 }
 0x19a   :  { %1377 = vmatpush3.bf16.msra.mxu1 %v1572_v39 }
 0x19b   :  { %1378 = vmatprep.subr.bf16.mxu1 %v1695_v61 }
 0x19e   :  { %1379 = vmatpush3.bf16.msra.mxu1 %v1573_v40 }
 0x241   :  { %v1349_v41 = vpop.f32.mrf.mxu1 }
 0x243   :  { %v1350_v43 = vpop.f32.mrf.mxu1 }
 0x244   :  { %v1351_v44 = vadd.f32 %v1350_v43, %v1349_v41 }
 0x245   :  { %v1352_v45 = vpop.f32.mrf.mxu1 }
 0x246   :  { %v1051_v46 = vadd.f32 %v1351_v44, %v1307_v42 }
 0x247   :  { %v1353_v47 = vpop.f32.mrf.mxu1 }
 0x248   :  { %v1056_v48 = vmax.f32 %v1051_v46, 0.0 }
 0x24a   :  { %v1057_v49 = vpack.c.bf16 %v1056_v48, %v1056_v48 }
 0x24c   :  { %1381 = vmatmul.mubr.bf16.vlgmr.msra.gmra.mxu1 %v1057_v49 }
 0x30c   :  { %v1163_v52 = vpop.f32.mrf.mxu1 }
 0x30d   :  { %v1164_v53 = vadd.f32 %v1324_v51, %v1163_v52 }
 0x30e   :  { %v1382_v54 = vpop.f32.mrf.mxu1 }
 0x30f   :  { %v1172_v55 = vsel %vm1171_vm2, %v1164_v53, -1e+30 }
 0x310   :  { %1173 = vmax.xlane.f32.xlu0 %v1172_v55  ;;  %v1166_v56 = vpop.f32.mrf.mxu1 }
 0x312   :  { %v1383_v57 = vpop.f32.mrf.mxu1 }
 0x399   :  { %v1174_v58 = vpop.xlane.xlu0 %1173 }
 0x39a   :  { %v1175_v59 = vsub.f32 %v1172_v55, %v1174_v58 }
 0x39c   :  { %v1176_v60 = vmul.f32 1.442695, %v1175_v59 }
 0x39e   :  { %1574 = vpow2.f32 %v1176_v60 }
 0x3ab   :  { %v1575_v61 = vpop.eup %1574 }
 0x3ac   :  { %1178 = vadd.xlane.f32.xlu0 %v1575_v61 }
 0x435   :  { %v1179_v62 = vpop.xlane.xlu0 %1178 }
 0x436   :  { %1576 = vlog2.f32 %v1179_v62 }
 0x443   :  { %v1577_v63 = vpop.eup %1576 }
 0x444   :  { %v1181_v0 = vmul.f32 0.6931472, %v1577_v63 }
 0x446   :  { %v1182_v1 = vsub.f32 %v1175_v59, %v1181_v0 }
 0x448   :  { %1183 = vst [vmem:[#allocation10] sm:$0xff] %v1182_v1 }
 0x449   :  { %1669 = shalt.err (!%p1666_p10)
}
 0x44a   :  { %1193 = dma.vmem_to_hbm [thread:$0]  %s1191_s26, 128, %s1785_s7, [#allocation4]  }
 0x44b   :  { %1684 = dma.done.wait [#allocation4], 128  }
 0x44c   :  { %1685 = vsyncadd [#allocation4], 4294967168 }
 0x44d   :  { %1197 = vsyncpa [#allocation3], 1 }
 0x44e   :  { %1198 = vsyncpa [#allocation6], 1 }
 0x44f   :  { %1199 = vsyncpa [#allocation9], 1 }
 0x450   :  { %1200 = vsyncpa [#allocation4], 1 }

</bundles_post_ra>
